<compile_context>
chip_gen: v7x
topology: tpu7x:2x2x1
jax: 0.10.0
libtpu: 0.0.40
codegen_flags: <defaults>
</compile_context>

<pallas_src>
import math

import numpy as np
import jax
import jax.numpy as jnp
from jax.experimental import pallas as pl
from jax.experimental.pallas import tpu as pltpu


def _level_geometry(level, h, w):
    """Replicates the PyTorch kernel/stride/padding math for one level."""
    kh = math.ceil(h / level)
    kw = math.ceil(w / level)
    sh, sw = kh, kw
    ph = math.floor((kh * level - h + 1) / 2)
    pw = math.floor((kw * level - w + 1) / 2)
    out_h = (h + 2 * ph - kh) // sh + 1   # F.max/avg_pool2d, ceil_mode=False
    out_w = (w + 2 * pw - kw) // sw + 1
    return kh, kw, sh, sw, ph, pw, out_h, out_w


def _window_table(num_levels, h, w):
    """Static window-membership matrix for all pyramid levels.

    Returns:
      member:      (T, h*w) float32, 1.0 where pixel belongs to the window.
      inv_area:    (T,)    float32, 1/(kh*kw) of the window's level.
      level_sizes: list of out_h*out_w per level.
    """
    rows, weights, level_sizes = [], [], []
    for i in range(num_levels):
        level = i + 1
        kh, kw, sh, sw, ph, pw, out_h, out_w = _level_geometry(level, h, w)
        level_sizes.append(out_h * out_w)
        inv_area = 1.0 / float(kh * kw)
        for oy in range(out_h):
            y0 = max(oy * sh - ph, 0)
            y1 = min(oy * sh - ph + kh, h)
            for ox in range(out_w):
                x0 = max(ox * sw - pw, 0)
                x1 = min(ox * sw - pw + kw, w)
                if y1 <= y0 or x1 <= x0:
                    raise ValueError(
                        "SPP window with no in-bounds pixels (num_levels too "
                        "large for this feature map); pooling is undefined.")
                m = np.zeros((h, w), dtype=np.float32)
                m[y0:y1, x0:x1] = 1.0
                rows.append(m.reshape(-1))
                weights.append(inv_area)
    member = np.stack(rows, axis=0).astype(np.float32)      # (T, h*w)
    inv_area = np.asarray(weights, dtype=np.float32)         # (T,)
    return member, inv_area, level_sizes


def _make_spp_max_kernel(r_blk, hw, total, chunk_rows=128):
    """Max-pool kernel: per row-chunk, per window, one select + one lane-max."""
    del hw  # shapes come from the refs

    def kernel(x_ref, m_ref, o_ref):
        # x_ref: (r_blk, HW)  lane-dense rows of N*C
        # m_ref: (T, HW)      {0,1} membership table (x dtype)
        # o_ref: (T, r_blk)   pooled maxima, R on lanes
        for r0 in range(0, r_blk, chunk_rows):
            rn = min(chunk_rows, r_blk - r0)
            xc = x_ref[r0:r0 + rn, :]                        # (rn, HW), <=32 vregs
            for t in range(total):
                mrow = m_ref[t, :]                           # (HW,) static row
                sel = jnp.where(mrow[None, :] != 0, xc, -jnp.inf)   # one vsel/elem
                o_ref[t, r0:r0 + rn] = jnp.max(sel, axis=1).astype(o_ref.dtype)

    return kernel


def _spp_avg_kernel(x_ref, p_ref, o_ref):
    # x_ref: (r_blk, HW) native dtype; p_ref: (T, HW) f32 1/(kh*kw) weights
    # o_ref: (T, r_blk)  lane-dense in R
    acc = jax.lax.dot_general(
        p_ref[...], x_ref[...],
        dimension_numbers=(((1,), (1,)), ((), ())),          # contract HW on both
        preferred_element_type=jnp.float32)                   # MXU, f32 accumulate
    o_ref[...] = acc.astype(o_ref.dtype)


def _pick_row_block(r, row_block):
    if r <= row_block:
        return r                                  # full dim -> always legal block
    rb = max(128, (row_block // 128) * 128)       # lane-dense output stores
    half = -(-r // 2)                             # >=2 grid steps (v7x megacore)
    half = -(-half // 128) * 128
    return min(rb, half)


def spp_layer(x, num_levels=3, pool_type="max_pool", row_block=512):
    n, c, h, w = x.shape
    if not jnp.issubdtype(x.dtype, jnp.floating):
        raise TypeError("spp_layer Pallas kernel supports floating-point inputs "
                        "only (max pool uses a -inf fill).")
    hw = h * w
    member, inv_area, level_sizes = _window_table(num_levels, h, w)
    total = int(member.shape[0])

    r = n * c
    x2 = x.reshape(r, hw)                 # free contiguous reshape -> lane-dense
    r_blk = _pick_row_block(r, row_block)
    grid = (pl.cdiv(r, r_blk),)
    x_spec = pl.BlockSpec((r_blk, hw), lambda i: (i, 0))
    aux_spec = pl.BlockSpec((total, hw), lambda i: (0, 0))
    out_spec = pl.BlockSpec((total, r_blk), lambda i: (0, i))
    params = pltpu.CompilerParams(dimension_semantics=("parallel",))

    itemsize = x.dtype.itemsize
    cost = pl.CostEstimate(
        flops=2 * r * hw * total,
        transcendentals=0,
        bytes_accessed=r * hw * itemsize + total * r * itemsize + total * hw * 4)

    if pool_type == "max_pool":
        aux = jnp.asarray(member, dtype=x.dtype)                     # (T, HW) {0,1}
        kernel = _make_spp_max_kernel(r_blk, hw, total)
    else:
        aux = jnp.asarray(member * inv_area[:, None], dtype=jnp.float32)  # (T, HW)
        kernel = _spp_avg_kernel

    pooled_tr = pl.pallas_call(                                       # (T, R)
        kernel,
        out_shape=jax.ShapeDtypeStruct((total, r), x.dtype),
        grid=grid,
        in_specs=[x_spec, aux_spec],
        out_specs=out_spec,
        compiler_params=params,
        cost_estimate=cost,
    )(x2, aux)

    # Epilogue glue: reproduce PyTorch's per-level .view(num, -1) + torch.cat
    # order (c-major, spatial-minor within each level) by reordering only the
    # tiny per-level chunks of the (T, R) kernel output -- no full transpose.
    outs = []
    t0 = 0
    for s in level_sizes:
        chunk = pooled_tr[t0:t0 + s]                                  # (s, n*c)
        outs.append(chunk.reshape(s, n, c).transpose(1, 2, 0).reshape(n, c * s))
        t0 += s
    return jnp.concatenate(outs, axis=1)


def spp_reference(x, num_levels=3, pool_type="max_pool"):
    """Pure-JAX reference using lax.reduce_window (mirrors F.max/avg_pool2d)."""
    n, c, h, w = x.shape
    outs = []
    for i in range(num_levels):
        level = i + 1
        kh, kw, sh, sw, ph, pw, _, _ = _level_geometry(level, h, w)
        if pool_type == "max_pool":
            xp = jnp.pad(
                x, ((0, 0), (0, 0), (ph, ph), (pw, pw)), constant_values=-jnp.inf
            )
            pooled = jax.lax.reduce_window(
                xp, -jnp.inf, jax.lax.max, (1, 1, kh, kw), (1, 1, sh, sw), "VALID"
            )
        else:
            xp = jnp.pad(x, ((0, 0), (0, 0), (ph, ph), (pw, pw)))
            pooled = (
                jax.lax.reduce_window(
                    xp, 0.0, jax.lax.add, (1, 1, kh, kw), (1, 1, sh, sw), "VALID"
                )
                / float(kh * kw)
            )
        outs.append(pooled.reshape(n, -1))
    return jnp.concatenate(outs, axis=1)


if __name__ == "__main__":
    key = jax.random.PRNGKey(0)
    # SPPLayer has no learnable parameters; only the input tensor is needed.
    x = jax.random.normal(key, (2, 4, 16, 16), dtype=jnp.float32)
    num_levels = 3

    out_max = spp_layer(x, num_levels=num_levels, pool_type="max_pool")
    jax.block_until_ready(out_max)
    ref_max = spp_reference(x, num_levels=num_levels, pool_type="max_pool")
    assert out_max.shape == (2, 4 * (1 + 4 + 9)), out_max.shape
    assert jnp.allclose(out_max, ref_max, atol=1e-5, rtol=1e-5), "max_pool mismatch"

    out_avg = spp_layer(x, num_levels=num_levels, pool_type="avg_pool")
    jax.block_until_ready(out_avg)
    ref_avg = spp_reference(x, num_levels=num_levels, pool_type="avg_pool")
    assert jnp.allclose(out_avg, ref_avg, atol=1e-3, rtol=1e-3), "avg_pool mismatch"

    print("KERNEL_OK")
</pallas_src>

<mosaic_0001>
module attributes {stable_mosaic.version = 11 : i64} {
  func.func @kernel(%arg0: i32, %arg1: memref<8x256xf32, #tpu.memory_space<vmem>>, %arg2: memref<14x256xf32, #tpu.memory_space<vmem>>, %arg3: memref<14x8xf32, #tpu.memory_space<vmem>>) attributes {dimension_semantics = [#tpu.dimension_semantics<parallel>], iteration_bounds = array<i64: 1>, scalar_prefetch = 0 : i64, scratch_operands = 0 : i64, tpu.core_type = #tpu.core_type<tc>, window_params = [{transform_indices = @transform_0, window_bounds = array<i64: 8, 256>}, {pipeline_mode = #tpu.pipeline_mode<synchronous>, transform_indices = @transform_1, window_bounds = array<i64: 14, 256>}, {transform_indices = @transform_2, window_bounds = array<i64: 14, 8>}]} {
    %c0 = arith.constant 0 : index
    %c0_0 = arith.constant 0 : index
    %0 = vector.load %arg1[%c0, %c0_0] : memref<8x256xf32, #tpu.memory_space<vmem>>, vector<8x256xf32>
    %c0_1 = arith.constant 0 : index
    %c0_2 = arith.constant 0 : index
    %1 = vector.load %arg2[%c0_1, %c0_2] : memref<14x256xf32, #tpu.memory_space<vmem>>, vector<1x256xf32>
    %2 = vector.shape_cast %1 : vector<1x256xf32> to vector<256xf32>
    %3 = vector.shape_cast %2 : vector<256xf32> to vector<1x256xf32>
    %cst = arith.constant 0.000000e+00 : f32
    %4 = vector.broadcast %cst : f32 to vector<1x256xf32>
    %5 = arith.cmpf one, %3, %4 : vector<1x256xf32>
    %cst_3 = arith.constant 0xFF800000 : f32
    %6 = vector.shape_cast %5 : vector<1x256xi1> to vector<1x256xi1>
    %7 = vector.broadcast %6 : vector<1x256xi1> to vector<8x256xi1>
    %8 = vector.broadcast %cst_3 : f32 to vector<8x256xf32>
    %9 = arith.select %7, %0, %8 : vector<8x256xi1>, vector<8x256xf32>
    %cst_4 = arith.constant dense<0xFF800000> : vector<8xf32>
    %10 = vector.multi_reduction <maximumf>, %9, %cst_4 [1] : vector<8x256xf32> to vector<8xf32>
    %c0_5 = arith.constant 0 : index
    %c0_6 = arith.constant 0 : index
    %11 = vector.load %arg3[%c0_5, %c0_6] : memref<14x8xf32, #tpu.memory_space<vmem>>, vector<1x8xf32>
    %12 = vector.shape_cast %11 : vector<1x8xf32> to vector<8xf32>
    %13 = vector.shape_cast %10 : vector<8xf32> to vector<1x8xf32>
    tpu.vector_store %arg3[%c0_5, %c0_6], %13 {strides = array<i32>} : memref<14x8xf32, #tpu.memory_space<vmem>>, vector<1x8xf32>,
    %c1 = arith.constant 1 : index
    %c0_7 = arith.constant 0 : index
    %14 = vector.load %arg2[%c1, %c0_7] : memref<14x256xf32, #tpu.memory_space<vmem>>, vector<1x256xf32>
    %15 = vector.shape_cast %14 : vector<1x256xf32> to vector<256xf32>
    %16 = vector.shape_cast %15 : vector<256xf32> to vector<1x256xf32>
    %cst_8 = arith.constant 0.000000e+00 : f32
    %17 = vector.broadcast %cst_8 : f32 to vector<1x256xf32>
    %18 = arith.cmpf one, %16, %17 : vector<1x256xf32>
    %cst_9 = arith.constant 0xFF800000 : f32
    %19 = vector.shape_cast %18 : vector<1x256xi1> to vector<1x256xi1>
    %20 = vector.broadcast %19 : vector<1x256xi1> to vector<8x256xi1>
    %21 = vector.broadcast %cst_9 : f32 to vector<8x256xf32>
    %22 = arith.select %20, %0, %21 : vector<8x256xi1>, vector<8x256xf32>
    %cst_10 = arith.constant dense<0xFF800000> : vector<8xf32>
    %23 = vector.multi_reduction <maximumf>, %22, %cst_10 [1] : vector<8x256xf32> to vector<8xf32>
    %c1_11 = arith.constant 1 : index
    %c0_12 = arith.constant 0 : index
    %24 = vector.load %arg3[%c1_11, %c0_12] : memref<14x8xf32, #tpu.memory_space<vmem>>, vector<1x8xf32>
    %25 = vector.shape_cast %24 : vector<1x8xf32> to vector<8xf32>
    %26 = vector.shape_cast %23 : vector<8xf32> to vector<1x8xf32>
    tpu.vector_store %arg3[%c1_11, %c0_12], %26 {strides = array<i32>} : memref<14x8xf32, #tpu.memory_space<vmem>>, vector<1x8xf32>,
    %c2 = arith.constant 2 : index
    %c0_13 = arith.constant 0 : index
    %27 = vector.load %arg2[%c2, %c0_13] : memref<14x256xf32, #tpu.memory_space<vmem>>, vector<1x256xf32>
    %28 = vector.shape_cast %27 : vector<1x256xf32> to vector<256xf32>
    %29 = vector.shape_cast %28 : vector<256xf32> to vector<1x256xf32>
    %cst_14 = arith.constant 0.000000e+00 : f32
    %30 = vector.broadcast %cst_14 : f32 to vector<1x256xf32>
    %31 = arith.cmpf one, %29, %30 : vector<1x256xf32>
    %cst_15 = arith.constant 0xFF800000 : f32
    %32 = vector.shape_cast %31 : vector<1x256xi1> to vector<1x256xi1>
    %33 = vector.broadcast %32 : vector<1x256xi1> to vector<8x256xi1>
    %34 = vector.broadcast %cst_15 : f32 to vector<8x256xf32>
    %35 = arith.select %33, %0, %34 : vector<8x256xi1>, vector<8x256xf32>
    %cst_16 = arith.constant dense<0xFF800000> : vector<8xf32>
    %36 = vector.multi_reduction <maximumf>, %35, %cst_16 [1] : vector<8x256xf32> to vector<8xf32>
    %c2_17 = arith.constant 2 : index
    %c0_18 = arith.constant 0 : index
    %37 = vector.load %arg3[%c2_17, %c0_18] : memref<14x8xf32, #tpu.memory_space<vmem>>, vector<1x8xf32>
    %38 = vector.shape_cast %37 : vector<1x8xf32> to vector<8xf32>
    %39 = vector.shape_cast %36 : vector<8xf32> to vector<1x8xf32>
    tpu.vector_store %arg3[%c2_17, %c0_18], %39 {strides = array<i32>} : memref<14x8xf32, #tpu.memory_space<vmem>>, vector<1x8xf32>,
    %c3 = arith.constant 3 : index
    %c0_19 = arith.constant 0 : index
    %40 = vector.load %arg2[%c3, %c0_19] : memref<14x256xf32, #tpu.memory_space<vmem>>, vector<1x256xf32>
    %41 = vector.shape_cast %40 : vector<1x256xf32> to vector<256xf32>
    %42 = vector.shape_cast %41 : vector<256xf32> to vector<1x256xf32>
    %cst_20 = arith.constant 0.000000e+00 : f32
    %43 = vector.broadcast %cst_20 : f32 to vector<1x256xf32>
    %44 = arith.cmpf one, %42, %43 : vector<1x256xf32>
    %cst_21 = arith.constant 0xFF800000 : f32
    %45 = vector.shape_cast %44 : vector<1x256xi1> to vector<1x256xi1>
    %46 = vector.broadcast %45 : vector<1x256xi1> to vector<8x256xi1>
    %47 = vector.broadcast %cst_21 : f32 to vector<8x256xf32>
    %48 = arith.select %46, %0, %47 : vector<8x256xi1>, vector<8x256xf32>
    %cst_22 = arith.constant dense<0xFF800000> : vector<8xf32>
    %49 = vector.multi_reduction <maximumf>, %48, %cst_22 [1] : vector<8x256xf32> to vector<8xf32>
    %c3_23 = arith.constant 3 : index
    %c0_24 = arith.constant 0 : index
    %50 = vector.load %arg3[%c3_23, %c0_24] : memref<14x8xf32, #tpu.memory_space<vmem>>, vector<1x8xf32>
    %51 = vector.shape_cast %50 : vector<1x8xf32> to vector<8xf32>
    %52 = vector.shape_cast %49 : vector<8xf32> to vector<1x8xf32>
    tpu.vector_store %arg3[%c3_23, %c0_24], %52 {strides = array<i32>} : memref<14x8xf32, #tpu.memory_space<vmem>>, vector<1x8xf32>,
    %c4 = arith.constant 4 : index
    %c0_25 = arith.constant 0 : index
    %53 = vector.load %arg2[%c4, %c0_25] : memref<14x256xf32, #tpu.memory_space<vmem>>, vector<1x256xf32>
    %54 = vector.shape_cast %53 : vector<1x256xf32> to vector<256xf32>
    %55 = vector.shape_cast %54 : vector<256xf32> to vector<1x256xf32>
    %cst_26 = arith.constant 0.000000e+00 : f32
    %56 = vector.broadcast %cst_26 : f32 to vector<1x256xf32>
    %57 = arith.cmpf one, %55, %56 : vector<1x256xf32>
    %cst_27 = arith.constant 0xFF800000 : f32
    %58 = vector.shape_cast %57 : vector<1x256xi1> to vector<1x256xi1>
    %59 = vector.broadcast %58 : vector<1x256xi1> to vector<8x256xi1>
    %60 = vector.broadcast %cst_27 : f32 to vector<8x256xf32>
    %61 = arith.select %59, %0, %60 : vector<8x256xi1>, vector<8x256xf32>
    %cst_28 = arith.constant dense<0xFF800000> : vector<8xf32>
    %62 = vector.multi_reduction <maximumf>, %61, %cst_28 [1] : vector<8x256xf32> to vector<8xf32>
    %c4_29 = arith.constant 4 : index
    %c0_30 = arith.constant 0 : index
    %63 = vector.load %arg3[%c4_29, %c0_30] : memref<14x8xf32, #tpu.memory_space<vmem>>, vector<1x8xf32>
    %64 = vector.shape_cast %63 : vector<1x8xf32> to vector<8xf32>
    %65 = vector.shape_cast %62 : vector<8xf32> to vector<1x8xf32>
    tpu.vector_store %arg3[%c4_29, %c0_30], %65 {strides = array<i32>} : memref<14x8xf32, #tpu.memory_space<vmem>>, vector<1x8xf32>,
    %c5 = arith.constant 5 : index
    %c0_31 = arith.constant 0 : index
    %66 = vector.load %arg2[%c5, %c0_31] : memref<14x256xf32, #tpu.memory_space<vmem>>, vector<1x256xf32>
    %67 = vector.shape_cast %66 : vector<1x256xf32> to vector<256xf32>
    %68 = vector.shape_cast %67 : vector<256xf32> to vector<1x256xf32>
    %cst_32 = arith.constant 0.000000e+00 : f32
    %69 = vector.broadcast %cst_32 : f32 to vector<1x256xf32>
    %70 = arith.cmpf one, %68, %69 : vector<1x256xf32>
    %cst_33 = arith.constant 0xFF800000 : f32
    %71 = vector.shape_cast %70 : vector<1x256xi1> to vector<1x256xi1>
    %72 = vector.broadcast %71 : vector<1x256xi1> to vector<8x256xi1>
    %73 = vector.broadcast %cst_33 : f32 to vector<8x256xf32>
    %74 = arith.select %72, %0, %73 : vector<8x256xi1>, vector<8x256xf32>
    %cst_34 = arith.constant dense<0xFF800000> : vector<8xf32>
    %75 = vector.multi_reduction <maximumf>, %74, %cst_34 [1] : vector<8x256xf32> to vector<8xf32>
    %c5_35 = arith.constant 5 : index
    %c0_36 = arith.constant 0 : index
    %76 = vector.load %arg3[%c5_35, %c0_36] : memref<14x8xf32, #tpu.memory_space<vmem>>, vector<1x8xf32>
    %77 = vector.shape_cast %76 : vector<1x8xf32> to vector<8xf32>
    %78 = vector.shape_cast %75 : vector<8xf32> to vector<1x8xf32>
    tpu.vector_store %arg3[%c5_35, %c0_36], %78 {strides = array<i32>} : memref<14x8xf32, #tpu.memory_space<vmem>>, vector<1x8xf32>,
    %c6 = arith.constant 6 : index
    %c0_37 = arith.constant 0 : index
    %79 = vector.load %arg2[%c6, %c0_37] : memref<14x256xf32, #tpu.memory_space<vmem>>, vector<1x256xf32>
    %80 = vector.shape_cast %79 : vector<1x256xf32> to vector<256xf32>
    %81 = vector.shape_cast %80 : vector<256xf32> to vector<1x256xf32>
    %cst_38 = arith.constant 0.000000e+00 : f32
    %82 = vector.broadcast %cst_38 : f32 to vector<1x256xf32>
    %83 = arith.cmpf one, %81, %82 : vector<1x256xf32>
    %cst_39 = arith.constant 0xFF800000 : f32
    %84 = vector.shape_cast %83 : vector<1x256xi1> to vector<1x256xi1>
    %85 = vector.broadcast %84 : vector<1x256xi1> to vector<8x256xi1>
    %86 = vector.broadcast %cst_39 : f32 to vector<8x256xf32>
    %87 = arith.select %85, %0, %86 : vector<8x256xi1>, vector<8x256xf32>
    %cst_40 = arith.constant dense<0xFF800000> : vector<8xf32>
    %88 = vector.multi_reduction <maximumf>, %87, %cst_40 [1] : vector<8x256xf32> to vector<8xf32>
    %c6_41 = arith.constant 6 : index
    %c0_42 = arith.constant 0 : index
    %89 = vector.load %arg3[%c6_41, %c0_42] : memref<14x8xf32, #tpu.memory_space<vmem>>, vector<1x8xf32>
    %90 = vector.shape_cast %89 : vector<1x8xf32> to vector<8xf32>
    %91 = vector.shape_cast %88 : vector<8xf32> to vector<1x8xf32>
    tpu.vector_store %arg3[%c6_41, %c0_42], %91 {strides = array<i32>} : memref<14x8xf32, #tpu.memory_space<vmem>>, vector<1x8xf32>,
    %c7 = arith.constant 7 : index
    %c0_43 = arith.constant 0 : index
    %92 = vector.load %arg2[%c7, %c0_43] : memref<14x256xf32, #tpu.memory_space<vmem>>, vector<1x256xf32>
    %93 = vector.shape_cast %92 : vector<1x256xf32> to vector<256xf32>
    %94 = vector.shape_cast %93 : vector<256xf32> to vector<1x256xf32>
    %cst_44 = arith.constant 0.000000e+00 : f32
    %95 = vector.broadcast %cst_44 : f32 to vector<1x256xf32>
    %96 = arith.cmpf one, %94, %95 : vector<1x256xf32>
    %cst_45 = arith.constant 0xFF800000 : f32
    %97 = vector.shape_cast %96 : vector<1x256xi1> to vector<1x256xi1>
    %98 = vector.broadcast %97 : vector<1x256xi1> to vector<8x256xi1>
    %99 = vector.broadcast %cst_45 : f32 to vector<8x256xf32>
    %100 = arith.select %98, %0, %99 : vector<8x256xi1>, vector<8x256xf32>
    %cst_46 = arith.constant dense<0xFF800000> : vector<8xf32>
    %101 = vector.multi_reduction <maximumf>, %100, %cst_46 [1] : vector<8x256xf32> to vector<8xf32>
    %c7_47 = arith.constant 7 : index
    %c0_48 = arith.constant 0 : index
    %102 = vector.load %arg3[%c7_47, %c0_48] : memref<14x8xf32, #tpu.memory_space<vmem>>, vector<1x8xf32>
    %103 = vector.shape_cast %102 : vector<1x8xf32> to vector<8xf32>
    %104 = vector.shape_cast %101 : vector<8xf32> to vector<1x8xf32>
    tpu.vector_store %arg3[%c7_47, %c0_48], %104 {strides = array<i32>} : memref<14x8xf32, #tpu.memory_space<vmem>>, vector<1x8xf32>,
    %c8 = arith.constant 8 : index
    %c0_49 = arith.constant 0 : index
    %105 = vector.load %arg2[%c8, %c0_49] : memref<14x256xf32, #tpu.memory_space<vmem>>, vector<1x256xf32>
    %106 = vector.shape_cast %105 : vector<1x256xf32> to vector<256xf32>
    %107 = vector.shape_cast %106 : vector<256xf32> to vector<1x256xf32>
    %cst_50 = arith.constant 0.000000e+00 : f32
    %108 = vector.broadcast %cst_50 : f32 to vector<1x256xf32>
    %109 = arith.cmpf one, %107, %108 : vector<1x256xf32>
    %cst_51 = arith.constant 0xFF800000 : f32
    %110 = vector.shape_cast %109 : vector<1x256xi1> to vector<1x256xi1>
    %111 = vector.broadcast %110 : vector<1x256xi1> to vector<8x256xi1>
    %112 = vector.broadcast %cst_51 : f32 to vector<8x256xf32>
    %113 = arith.select %111, %0, %112 : vector<8x256xi1>, vector<8x256xf32>
    %cst_52 = arith.constant dense<0xFF800000> : vector<8xf32>
    %114 = vector.multi_reduction <maximumf>, %113, %cst_52 [1] : vector<8x256xf32> to vector<8xf32>
    %c8_53 = arith.constant 8 : index
    %c0_54 = arith.constant 0 : index
    %115 = vector.load %arg3[%c8_53, %c0_54] : memref<14x8xf32, #tpu.memory_space<vmem>>, vector<1x8xf32>
    %116 = vector.shape_cast %115 : vector<1x8xf32> to vector<8xf32>
    %117 = vector.shape_cast %114 : vector<8xf32> to vector<1x8xf32>
    tpu.vector_store %arg3[%c8_53, %c0_54], %117 {strides = array<i32>} : memref<14x8xf32, #tpu.memory_space<vmem>>, vector<1x8xf32>,
    %c9 = arith.constant 9 : index
    %c0_55 = arith.constant 0 : index
    %118 = vector.load %arg2[%c9, %c0_55] : memref<14x256xf32, #tpu.memory_space<vmem>>, vector<1x256xf32>
    %119 = vector.shape_cast %118 : vector<1x256xf32> to vector<256xf32>
    %120 = vector.shape_cast %119 : vector<256xf32> to vector<1x256xf32>
    %cst_56 = arith.constant 0.000000e+00 : f32
    %121 = vector.broadcast %cst_56 : f32 to vector<1x256xf32>
    %122 = arith.cmpf one, %120, %121 : vector<1x256xf32>
    %cst_57 = arith.constant 0xFF800000 : f32
    %123 = vector.shape_cast %122 : vector<1x256xi1> to vector<1x256xi1>
    %124 = vector.broadcast %123 : vector<1x256xi1> to vector<8x256xi1>
    %125 = vector.broadcast %cst_57 : f32 to vector<8x256xf32>
    %126 = arith.select %124, %0, %125 : vector<8x256xi1>, vector<8x256xf32>
    %cst_58 = arith.constant dense<0xFF800000> : vector<8xf32>
    %127 = vector.multi_reduction <maximumf>, %126, %cst_58 [1] : vector<8x256xf32> to vector<8xf32>
    %c9_59 = arith.constant 9 : index
    %c0_60 = arith.constant 0 : index
    %128 = vector.load %arg3[%c9_59, %c0_60] : memref<14x8xf32, #tpu.memory_space<vmem>>, vector<1x8xf32>
    %129 = vector.shape_cast %128 : vector<1x8xf32> to vector<8xf32>
    %130 = vector.shape_cast %127 : vector<8xf32> to vector<1x8xf32>
    tpu.vector_store %arg3[%c9_59, %c0_60], %130 {strides = array<i32>} : memref<14x8xf32, #tpu.memory_space<vmem>>, vector<1x8xf32>,
    %c10 = arith.constant 10 : index
    %c0_61 = arith.constant 0 : index
    %131 = vector.load %arg2[%c10, %c0_61] : memref<14x256xf32, #tpu.memory_space<vmem>>, vector<1x256xf32>
    %132 = vector.shape_cast %131 : vector<1x256xf32> to vector<256xf32>
    %133 = vector.shape_cast %132 : vector<256xf32> to vector<1x256xf32>
    %cst_62 = arith.constant 0.000000e+00 : f32
    %134 = vector.broadcast %cst_62 : f32 to vector<1x256xf32>
    %135 = arith.cmpf one, %133, %134 : vector<1x256xf32>
    %cst_63 = arith.constant 0xFF800000 : f32
    %136 = vector.shape_cast %135 : vector<1x256xi1> to vector<1x256xi1>
    %137 = vector.broadcast %136 : vector<1x256xi1> to vector<8x256xi1>
    %138 = vector.broadcast %cst_63 : f32 to vector<8x256xf32>
    %139 = arith.select %137, %0, %138 : vector<8x256xi1>, vector<8x256xf32>
    %cst_64 = arith.constant dense<0xFF800000> : vector<8xf32>
    %140 = vector.multi_reduction <maximumf>, %139, %cst_64 [1] : vector<8x256xf32> to vector<8xf32>
    %c10_65 = arith.constant 10 : index
    %c0_66 = arith.constant 0 : index
    %141 = vector.load %arg3[%c10_65, %c0_66] : memref<14x8xf32, #tpu.memory_space<vmem>>, vector<1x8xf32>
    %142 = vector.shape_cast %141 : vector<1x8xf32> to vector<8xf32>
    %143 = vector.shape_cast %140 : vector<8xf32> to vector<1x8xf32>
    tpu.vector_store %arg3[%c10_65, %c0_66], %143 {strides = array<i32>} : memref<14x8xf32, #tpu.memory_space<vmem>>, vector<1x8xf32>,
    %c11 = arith.constant 11 : index
    %c0_67 = arith.constant 0 : index
    %144 = vector.load %arg2[%c11, %c0_67] : memref<14x256xf32, #tpu.memory_space<vmem>>, vector<1x256xf32>
    %145 = vector.shape_cast %144 : vector<1x256xf32> to vector<256xf32>
    %146 = vector.shape_cast %145 : vector<256xf32> to vector<1x256xf32>
    %cst_68 = arith.constant 0.000000e+00 : f32
    %147 = vector.broadcast %cst_68 : f32 to vector<1x256xf32>
    %148 = arith.cmpf one, %146, %147 : vector<1x256xf32>
    %cst_69 = arith.constant 0xFF800000 : f32
    %149 = vector.shape_cast %148 : vector<1x256xi1> to vector<1x256xi1>
    %150 = vector.broadcast %149 : vector<1x256xi1> to vector<8x256xi1>
    %151 = vector.broadcast %cst_69 : f32 to vector<8x256xf32>
    %152 = arith.select %150, %0, %151 : vector<8x256xi1>, vector<8x256xf32>
    %cst_70 = arith.constant dense<0xFF800000> : vector<8xf32>
    %153 = vector.multi_reduction <maximumf>, %152, %cst_70 [1] : vector<8x256xf32> to vector<8xf32>
    %c11_71 = arith.constant 11 : index
    %c0_72 = arith.constant 0 : index
    %154 = vector.load %arg3[%c11_71, %c0_72] : memref<14x8xf32, #tpu.memory_space<vmem>>, vector<1x8xf32>
    %155 = vector.shape_cast %154 : vector<1x8xf32> to vector<8xf32>
    %156 = vector.shape_cast %153 : vector<8xf32> to vector<1x8xf32>
    tpu.vector_store %arg3[%c11_71, %c0_72], %156 {strides = array<i32>} : memref<14x8xf32, #tpu.memory_space<vmem>>, vector<1x8xf32>,
    %c12 = arith.constant 12 : index
    %c0_73 = arith.constant 0 : index
    %157 = vector.load %arg2[%c12, %c0_73] : memref<14x256xf32, #tpu.memory_space<vmem>>, vector<1x256xf32>
    %158 = vector.shape_cast %157 : vector<1x256xf32> to vector<256xf32>
    %159 = vector.shape_cast %158 : vector<256xf32> to vector<1x256xf32>
    %cst_74 = arith.constant 0.000000e+00 : f32
    %160 = vector.broadcast %cst_74 : f32 to vector<1x256xf32>
    %161 = arith.cmpf one, %159, %160 : vector<1x256xf32>
    %cst_75 = arith.constant 0xFF800000 : f32
    %162 = vector.shape_cast %161 : vector<1x256xi1> to vector<1x256xi1>
    %163 = vector.broadcast %162 : vector<1x256xi1> to vector<8x256xi1>
    %164 = vector.broadcast %cst_75 : f32 to vector<8x256xf32>
    %165 = arith.select %163, %0, %164 : vector<8x256xi1>, vector<8x256xf32>
    %cst_76 = arith.constant dense<0xFF800000> : vector<8xf32>
    %166 = vector.multi_reduction <maximumf>, %165, %cst_76 [1] : vector<8x256xf32> to vector<8xf32>
    %c12_77 = arith.constant 12 : index
    %c0_78 = arith.constant 0 : index
    %167 = vector.load %arg3[%c12_77, %c0_78] : memref<14x8xf32, #tpu.memory_space<vmem>>, vector<1x8xf32>
    %168 = vector.shape_cast %167 : vector<1x8xf32> to vector<8xf32>
    %169 = vector.shape_cast %166 : vector<8xf32> to vector<1x8xf32>
    tpu.vector_store %arg3[%c12_77, %c0_78], %169 {strides = array<i32>} : memref<14x8xf32, #tpu.memory_space<vmem>>, vector<1x8xf32>,
    %c13 = arith.constant 13 : index
    %c0_79 = arith.constant 0 : index
    %170 = vector.load %arg2[%c13, %c0_79] : memref<14x256xf32, #tpu.memory_space<vmem>>, vector<1x256xf32>
    %171 = vector.shape_cast %170 : vector<1x256xf32> to vector<256xf32>
    %172 = vector.shape_cast %171 : vector<256xf32> to vector<1x256xf32>
    %cst_80 = arith.constant 0.000000e+00 : f32
    %173 = vector.broadcast %cst_80 : f32 to vector<1x256xf32>
    %174 = arith.cmpf one, %172, %173 : vector<1x256xf32>
    %cst_81 = arith.constant 0xFF800000 : f32
    %175 = vector.shape_cast %174 : vector<1x256xi1> to vector<1x256xi1>
    %176 = vector.broadcast %175 : vector<1x256xi1> to vector<8x256xi1>
    %177 = vector.broadcast %cst_81 : f32 to vector<8x256xf32>
    %178 = arith.select %176, %0, %177 : vector<8x256xi1>, vector<8x256xf32>
    %cst_82 = arith.constant dense<0xFF800000> : vector<8xf32>
    %179 = vector.multi_reduction <maximumf>, %178, %cst_82 [1] : vector<8x256xf32> to vector<8xf32>
    %c13_83 = arith.constant 13 : index
    %c0_84 = arith.constant 0 : index
    %180 = vector.load %arg3[%c13_83, %c0_84] : memref<14x8xf32, #tpu.memory_space<vmem>>, vector<1x8xf32>
    %181 = vector.shape_cast %180 : vector<1x8xf32> to vector<8xf32>
    %182 = vector.shape_cast %179 : vector<8xf32> to vector<1x8xf32>
    tpu.vector_store %arg3[%c13_83, %c0_84], %182 {strides = array<i32>} : memref<14x8xf32, #tpu.memory_space<vmem>>, vector<1x8xf32>,
    return
  }
  func.func @transform_0(%arg0: i32) -> (i32, i32) {
    %c0_i32 = arith.constant 0 : i32
    %c0_i32_0 = arith.constant 0 : i32
    return %arg0, %c0_i32 : i32, i32
  }
  func.func @transform_1(%arg0: i32) -> (i32, i32) {
    %c0_i32 = arith.constant 0 : i32
    %c0_i32_0 = arith.constant 0 : i32
    %c0_i32_1 = arith.constant 0 : i32
    return %c0_i32, %c0_i32_0 : i32, i32
  }
  func.func @transform_2(%arg0: i32) -> (i32, i32) {
    %c0_i32 = arith.constant 0 : i32
    %c0_i32_0 = arith.constant 0 : i32
    return %c0_i32, %arg0 : i32, i32
  }
}

</mosaic_0001>

<bundles_post_ra>
// kernel: tpu_custom_call.1
= control target key start
LH: loop header
LB: loop body
LE: loop exit
PB: predicated region body
PF: predicated region fallthrough
CT: control target
= control target key end

     0   :  { %7 = vsyncpa [#allocation3], 0  ;;  %s667_s0 = inlined_call_operand.hbm [shape: f32[8,256], index: 0, kind: input, shape index: {}]   ;;  %s668_s1 = inlined_call_operand.hbm [shape: f32[14,256], index: 1, kind: input, shape index: {}]   ;;  %s669_s2 = inlined_call_operand.vmem [shape: f32[14,8], index: 2, kind: output, shape index: {}]  }
   0x1   :  { %8 = vsyncpa [#allocation5], 0  ;;  %s464_s9 = smov [#allocation2]   ;;  %s465_s11 = smov [#allocation4]  }
   0x2   :  { %s15_s10 = sshll.u32 %s464_s9, 4  ;;  %s24_s12 = sshll.u32 %s465_s11, 4  ;;  %s16_s10 = int_to_ptr.vmem [resolvable:$true] %s15_s10  ;;  %s484_s12 = int_to_ptr.vmem [resolvable:$true] %s24_s12 }
   0x3   :  { %s416_s15 = scalar_lea.hbm %s667_s0, 256 }
   0x4   :  { %p417_p0 = scmp.ne.s32.totalorder %s667_s0, %s416_s15  ;;  %p420_p1 = scmp.lt.u32.totalorder %s416_s15, %s667_s0 }
   0x6   :  { %p422_p2 = pnand %p420_p1, %p417_p0 }
   0x8   :  { %425 = shalt.err (!%p422_p2)
}
   0x9   :  { %s426_s20 = scalar_lea.vmem %s16_s10, 256  ;;  %p431_p4 = scmp.lt.s32.totalorder %s16_s10, %s16_s10 }
   0xa   :  { %p427_p3 = scmp.ne.s32.totalorder %s16_s10, %s426_s20  ;;  %p432_p5 = scmp.lt.s32.totalorder %s426_s20, %s426_s20 }
   0xc   :  { %p433_p6 = por %p432_p5, %p431_p4 }
   0xe   :  { %p434_p7 = pnand %p433_p6, %p427_p3 }
  0x10   :  { %437 = shalt.err (!%p434_p7)
}
  0x11   :  { %18 = dma.hbm_to_vmem [thread:$0]  %s667_s0, 256, %s16_s10, [#allocation3]  }
  0x12   :  { %s438_s25 = scalar_lea.hbm %s668_s1, 512 }
  0x13   :  { %p439_p8 = scmp.ne.s32.totalorder %s668_s1, %s438_s25  ;;  %p442_p9 = scmp.lt.u32.totalorder %s438_s25, %s668_s1 }
  0x15   :  { %p444_p10 = pnand %p442_p9, %p439_p8 }
  0x17   :  { %447 = shalt.err (!%p444_p10)
}
  0x18   :  { %s448_s30 = scalar_lea.vmem %s484_s12, 512  ;;  %p453_p12 = scmp.lt.s32.totalorder %s484_s12, %s484_s12 }
  0x19   :  { %p449_p11 = scmp.ne.s32.totalorder %s484_s12, %s448_s30  ;;  %p454_p13 = scmp.lt.s32.totalorder %s448_s30, %s448_s30 }
  0x1b   :  { %p455_p0 = por %p454_p13, %p453_p12 }
  0x1d   :  { %p456_p1 = pnand %p455_p0, %p449_p11 }
  0x1f   :  { %459 = shalt.err (!%p456_p1)
}
  0x20   :  { %s466_s0 = smov 256   ;;  %s467_s3 = smov 16  }
  0x21   :  { %30 = dma.hbm_to_vmem [thread:$0]  %s668_s1, 512, %s484_s12, [#allocation5], %s466_s0, %s466_s0, %s467_s3  }
  0x22   :  { %460 = dma.done.wait [#allocation3], 256  }
  0x23   :  { %461 = vsyncadd [#allocation3], 4294967040 }
  0x24   :  { %462 = dma.done.wait [#allocation5], 512  }
  0x25   :  { %463 = vsyncadd [#allocation5], 4294966784  ;;  %v42_v0 = vlaneseq  ;;  %v94_v6 = vld [vmem:[#allocation4 + $0x2] ss:$8 sm:$0x3]  ;;  %v521_v8 = vld [vmem:[#allocation2] sm:$0xff] }
  0x26   :  { %vm95_vm0 = vcmp.ne.f32.partialorder %v94_v6, 0.0  ;;  %v39_v7 = vld [vmem:[#allocation4] ss:$8 sm:$0x3]  ;;  %v468_v9 = vmov 0   ;;  %v524_v12 = vld [vmem:[#allocation2 + $0x8] sm:$0xff] }
  0x27   :  { %v43_v1 = vshrl.u32 %v42_v0, 7  ;;  %v59_v2 = vand.u32 127, %v42_v0  ;;  %v96_v10 = vsel %vm95_vm0, 1, %v468_v9  ;;  %vm40_vm1 = vcmp.ne.f32.partialorder %v39_v7, 0.0 }
  0x28   :  { %v120_v11 = vld [vmem:[#allocation4 + $0x3] ss:$8 sm:$0x3]  ;;  %v41_v15 = vsel %vm40_vm1, 1, %v468_v9 }
  0x29   :  { %v515_v3 = vsub.s32 %v59_v2, %v43_v1  ;;  %v517_v4 = vsub.s32 0, %v43_v1  ;;  %v519_v5 = vsub.s32 1, %v43_v1  ;;  %vm121_vm2 = vcmp.ne.f32.partialorder %v120_v11, 0.0  ;;  %v68_v16 = vld [vmem:[#allocation4 + $0x1] ss:$8 sm:$0x3] }
  0x2a   :  { %v122_v19 = vsel %vm121_vm2, 1, %v468_v9  ;;  %vm69_vm3 = vcmp.ne.f32.partialorder %v68_v16, 0.0  ;;  %v172_v20 = vld [vmem:[#allocation4 + $0x5] ss:$8 sm:$0x3] }
  0x2b   :  { %v100_v13 = vrot.slane %v96_v10, %v517_v4  ;;  %v104_v14 = vrot.slane %v96_v10, %v519_v5  ;;  %v45_v17 = vrot.slane %v41_v15, %v517_v4  ;;  %v49_v18 = vrot.slane %v41_v15, %v519_v5  ;;  %v146_v23 = vld [vmem:[#allocation4 + $0x4] ss:$8 sm:$0x3]  ;;  %v224_v29 = vld [vmem:[#allocation4 + $0x7] ss:$8 sm:$0x3] }
  0x2c   :  { %v126_v21 = vrot.slane %v122_v19, %v517_v4  ;;  %v130_v22 = vrot.slane %v122_v19, %v519_v5  ;;  %v70_v32 = vsel %vm69_vm3, 1, %v468_v9  ;;  %vm173_vm10 = vcmp.ne.f32.partialorder %v172_v20, 0.0  ;;  %v198_v40 = vld [vmem:[#allocation4 + $0x6] ss:$8 sm:$0x3] }
  0x2d   :  { %vm105_vm4 = vcmp.eq.s32.totalorder %v100_v13, 1  ;;  %vm106_vm5 = vcmp.eq.s32.totalorder %v104_v14, 1  ;;  %vm50_vm6 = vcmp.eq.s32.totalorder %v45_v17, 1  ;;  %vm51_vm7 = vcmp.eq.s32.totalorder %v49_v18, 1 }
  0x2e   :  { %v107_v24 = vsel %vm105_vm4, %v521_v8, -inf  ;;  %v108_v25 = vsel %vm106_vm5, %v524_v12, -inf  ;;  %v52_v27 = vsel %vm50_vm6, %v521_v8, -inf  ;;  %v53_v28 = vsel %vm51_vm7, %v524_v12, -inf }
  0x2f   :  { %v109_v26 = vmax.f32 %v107_v24, %v108_v25  ;;  %vm131_vm8 = vcmp.eq.s32.totalorder %v126_v21, 1  ;;  %v54_v30 = vmax.f32 %v52_v27, %v53_v28  ;;  %vm132_vm9 = vcmp.eq.s32.totalorder %v130_v22, 1  ;;  %v276_v51 = vld [vmem:[#allocation4 + $0x11] ss:$8 sm:$0x3] }
  0x30   :  { %v133_v31 = vsel %vm131_vm8, %v521_v8, -inf  ;;  %v134_v33 = vsel %vm132_vm9, %v524_v12, -inf  ;;  %v74_v34 = vrot.slane %v70_v32, %v517_v4  ;;  %v78_v35 = vrot.slane %v70_v32, %v519_v5  ;;  %v250_v54 = vld [vmem:[#allocation4 + $0x10] ss:$8 sm:$0x3] }
  0x31   :  { %110 = vmax.xlane.f32.xlu1 %v109_v26  ;;  %55 = vmax.xlane.f32.xlu0 %v54_v30  ;;  %v135_v36 = vmax.f32 %v133_v31, %v134_v33  ;;  %v174_v37 = vsel %vm173_vm10, 1, %v468_v9  ;;  %vm147_vm11 = vcmp.ne.f32.partialorder %v146_v23, 0.0  ;;  %vm225_vm12 = vcmp.ne.f32.partialorder %v224_v29, 0.0  ;;  %v328_v60 = vld [vmem:[#allocation4 + $0x13] ss:$8 sm:$0x3] }
  0x32   :  { %vm79_vm13 = vcmp.eq.s32.totalorder %v74_v34, 1  ;;  %vm80_vm14 = vcmp.eq.s32.totalorder %v78_v35, 1  ;;  %v178_v38 = vrot.slane %v174_v37, %v517_v4  ;;  %v182_v39 = vrot.slane %v174_v37, %v519_v5  ;;  %v302_v0 = vld [vmem:[#allocation4 + $0x12] ss:$8 sm:$0x3] }
  0x33   :  { %v81_v41 = vsel %vm79_vm13, %v521_v8, -inf  ;;  %v82_v42 = vsel %vm80_vm14, %v524_v12, -inf  ;;  %v148_v43 = vsel %vm147_vm11, 1, %v468_v9  ;;  %v226_v44 = vsel %vm225_vm12, 1, %v468_v9 }
  0x34   :  { %v83_v45 = vmax.f32 %v81_v41, %v82_v42  ;;  %vm183_vm15 = vcmp.eq.s32.totalorder %v178_v38, 1  ;;  %vm184_vm0 = vcmp.eq.s32.totalorder %v182_v39, 1  ;;  %v152_v46 = vrot.slane %v148_v43, %v517_v4  ;;  %v380_v16 = vld [vmem:[#allocation4 + $0x15] ss:$8 sm:$0x3] }
  0x35   :  { %136 = vmax.xlane.f32.xlu1 %v135_v36  ;;  %v185_v47 = vsel %vm183_vm15, %v521_v8, -inf  ;;  %v186_v48 = vsel %vm184_vm0, %v524_v12, -inf  ;;  %v156_v49 = vrot.slane %v148_v43, %v519_v5  ;;  %v230_v50 = vrot.slane %v226_v44, %v517_v4  ;;  %v354_v24 = vld [vmem:[#allocation4 + $0x14] ss:$8 sm:$0x3] }
  0x36   :  { %84 = vmax.xlane.f32.xlu0 %v83_v45  ;;  %v187_v52 = vmax.f32 %v185_v47, %v186_v48  ;;  %vm157_vm1 = vcmp.eq.s32.totalorder %v152_v46, 1  ;;  %v234_v53 = vrot.slane %v226_v44, %v519_v5  ;;  %vm199_vm2 = vcmp.ne.f32.partialorder %v198_v40, 0.0 }
  0x37   :  { %vm158_vm3 = vcmp.eq.s32.totalorder %v156_v49, 1  ;;  %v159_v55 = vsel %vm157_vm1, %v521_v8, -inf  ;;  %vm235_vm4 = vcmp.eq.s32.totalorder %v230_v50, 1  ;;  %v200_v56 = vsel %vm199_vm2, 1, %v468_v9 }
  0x38   :  { %v160_v57 = vsel %vm158_vm3, %v524_v12, -inf  ;;  %vm236_vm5 = vcmp.eq.s32.totalorder %v234_v53, 1  ;;  %v237_v58 = vsel %vm235_vm4, %v521_v8, -inf  ;;  %v204_v59 = vrot.slane %v200_v56, %v517_v4 }
  0x39   :  { %188 = vmax.xlane.f32.xlu1 %v187_v52  ;;  %v161_v61 = vmax.f32 %v159_v55, %v160_v57  ;;  %v238_v62 = vsel %vm236_vm5, %v524_v12, -inf  ;;  %v208_v63 = vrot.slane %v200_v56, %v519_v5  ;;  %vm277_vm6 = vcmp.ne.f32.partialorder %v276_v51, 0.0 }
  0x3a   :  { %v239_v1 = vmax.f32 %v237_v58, %v238_v62  ;;  %vm209_vm7 = vcmp.eq.s32.totalorder %v204_v59, 1  ;;  %v278_v2 = vsel %vm277_vm6, 1, %v468_v9  ;;  %vm251_vm8 = vcmp.ne.f32.partialorder %v250_v54, 0.0 }
  0x3b   :  { %162 = vmax.xlane.f32.xlu0 %v161_v61  ;;  %vm210_vm9 = vcmp.eq.s32.totalorder %v208_v63, 1  ;;  %v211_v6 = vsel %vm209_vm7, %v521_v8, -inf  ;;  %v282_v7 = vrot.slane %v278_v2, %v517_v4  ;;  %v286_v10 = vrot.slane %v278_v2, %v519_v5 }
  0x3c   :  { %v212_v11 = vsel %vm210_vm9, %v524_v12, -inf  ;;  %v252_v13 = vsel %vm251_vm8, 1, %v468_v9  ;;  %vm329_vm10 = vcmp.ne.f32.partialorder %v328_v60, 0.0  ;;  %vm303_vm11 = vcmp.ne.f32.partialorder %v302_v0, 0.0 }
  0x3d   :  { %240 = vmax.xlane.f32.xlu1 %v239_v1  ;;  %v213_v14 = vmax.f32 %v211_v6, %v212_v11  ;;  %vm287_vm12 = vcmp.eq.s32.totalorder %v282_v7, 1  ;;  %vm288_vm13 = vcmp.eq.s32.totalorder %v286_v10, 1  ;;  %v256_v15 = vrot.slane %v252_v13, %v517_v4 }
  0x3e   :  { %v289_v17 = vsel %vm287_vm12, %v521_v8, -inf  ;;  %v290_v18 = vsel %vm288_vm13, %v524_v12, -inf  ;;  %v260_v19 = vrot.slane %v252_v13, %v519_v5  ;;  %v330_v20 = vsel %vm329_vm10, 1, %v468_v9 }
  0x3f   :  { %214 = vmax.xlane.f32.xlu0 %v213_v14  ;;  %v291_v21 = vmax.f32 %v289_v17, %v290_v18  ;;  %vm261_vm14 = vcmp.eq.s32.totalorder %v256_v15, 1  ;;  %v334_v22 = vrot.slane %v330_v20, %v517_v4  ;;  %v338_v23 = vrot.slane %v330_v20, %v519_v5 }
  0x40   :  { %vm262_vm15 = vcmp.eq.s32.totalorder %v260_v19, 1  ;;  %v263_v25 = vsel %vm261_vm14, %v521_v8, -inf  ;;  %v304_v26 = vsel %vm303_vm11, 1, %v468_v9  ;;  %vm381_vm0 = vcmp.ne.f32.partialorder %v380_v16, 0.0 }
  0x41   :  { %292 = vmax.xlane.f32.xlu1 %v291_v21  ;;  %v264_v27 = vsel %vm262_vm15, %v524_v12, -inf  ;;  %vm339_vm1 = vcmp.eq.s32.totalorder %v334_v22, 1  ;;  %vm340_vm2 = vcmp.eq.s32.totalorder %v338_v23, 1  ;;  %v308_v28 = vrot.slane %v304_v26, %v517_v4 }
  0x42   :  { %v265_v29 = vmax.f32 %v263_v25, %v264_v27  ;;  %v341_v30 = vsel %vm339_vm1, %v521_v8, -inf  ;;  %v342_v31 = vsel %vm340_vm2, %v524_v12, -inf  ;;  %v312_v32 = vrot.slane %v304_v26, %v519_v5 }
  0x43   :  { %v343_v33 = vmax.f32 %v341_v30, %v342_v31  ;;  %vm313_vm3 = vcmp.eq.s32.totalorder %v308_v28, 1  ;;  %v382_v34 = vsel %vm381_vm0, 1, %v468_v9  ;;  %vm355_vm4 = vcmp.ne.f32.partialorder %v354_v24, 0.0 }
  0x44   :  { %266 = vmax.xlane.f32.xlu0 %v265_v29  ;;  %vm314_vm5 = vcmp.eq.s32.totalorder %v312_v32, 1  ;;  %v315_v35 = vsel %vm313_vm3, %v521_v8, -inf  ;;  %v386_v36 = vrot.slane %v382_v34, %v517_v4  ;;  %v390_v37 = vrot.slane %v382_v34, %v519_v5 }
  0x45   :  { %344 = vmax.xlane.f32.xlu1 %v343_v33  ;;  %v316_v38 = vsel %vm314_vm5, %v524_v12, -inf  ;;  %v356_v39 = vsel %vm355_vm4, 1, %v468_v9  ;;  %vm65_vm10 = vcmask 57344  }
  0x46   :  { %v317_v40 = vmax.f32 %v315_v35, %v316_v38  ;;  %vm391_vm6 = vcmp.eq.s32.totalorder %v386_v36, 1  ;;  %vm392_vm7 = vcmp.eq.s32.totalorder %v390_v37, 1  ;;  %v360_v41 = vrot.slane %v356_v39, %v517_v4 }
  0x47   :  { %v393_v42 = vsel %vm391_vm6, %v521_v8, -inf  ;;  %v394_v43 = vsel %vm392_vm7, %v524_v12, -inf  ;;  %v364_v44 = vrot.slane %v356_v39, %v519_v5 }
  0x48   :  { %318 = vmax.xlane.f32.xlu0 %v317_v40  ;;  %v395_v45 = vmax.f32 %v393_v42, %v394_v43  ;;  %vm365_vm8 = vcmp.eq.s32.totalorder %v360_v41, 1 }
  0x49   :  { %vm366_vm9 = vcmp.eq.s32.totalorder %v364_v44, 1  ;;  %v367_v46 = vsel %vm365_vm8, %v521_v8, -inf }
  0x4a   :  { %396 = vmax.xlane.f32.xlu1 %v395_v45  ;;  %v368_v9 = vsel %vm366_vm9, %v524_v12, -inf }
  0x4b   :  { %v369_v47 = vmax.f32 %v367_v46, %v368_v9 }
  0x4d   :  { %370 = vmax.xlane.f32.xlu0 %v369_v47 }
  0xbe   :  { %v111_v48 = vpop.xlane.xlu1 %110  ;;  %v56_v49 = vpop.xlane.xlu0 %55 }
  0xbf   :  { %v116_v4 = vrot.slane %v111_v48, %v515_v3  ;;  %v63_v50 = vrot.slane %v56_v49, %v515_v3 }
  0xc1   :  { %118 = vst.msk [vmem:[%s669_s2 + $0x2] sm:$0x1] %vm65_vm10, %v116_v4  ;;  %66 = vst.msk [vmem:[%s669_s2] sm:$0x1] %vm65_vm10, %v63_v50 }
  0xc2   :  { %v137_v5 = vpop.xlane.xlu1 %136 }
  0xc3   :  { %v142_v8 = vrot.slane %v137_v5, %v515_v3  ;;  %v85_v12 = vpop.xlane.xlu0 %84 }
  0xc4   :  { %v90_v51 = vrot.slane %v85_v12, %v515_v3 }
  0xc5   :  { %144 = vst.msk [vmem:[%s669_s2 + $0x3] sm:$0x1] %vm65_vm10, %v142_v8 }
  0xc6   :  { %v189_v52 = vpop.xlane.xlu1 %188  ;;  %92 = vst.msk [vmem:[%s669_s2 + $0x1] sm:$0x1] %vm65_vm10, %v90_v51 }
  0xc7   :  { %v194_v53 = vrot.slane %v189_v52, %v515_v3 }
  0xc8   :  { %v163_v54 = vpop.xlane.xlu0 %162 }
  0xc9   :  { %196 = vst.msk [vmem:[%s669_s2 + $0x5] sm:$0x1] %vm65_vm10, %v194_v53  ;;  %v168_v55 = vrot.slane %v163_v54, %v515_v3 }
  0xca   :  { %v241_v56 = vpop.xlane.xlu1 %240 }
  0xcb   :  { %v246_v57 = vrot.slane %v241_v56, %v515_v3  ;;  %170 = vst.msk [vmem:[%s669_s2 + $0x4] sm:$0x1] %vm65_vm10, %v168_v55 }
  0xcc   :  { %v215_v58 = vpop.xlane.xlu0 %214 }
  0xcd   :  { %248 = vst.msk [vmem:[%s669_s2 + $0x7] sm:$0x1] %vm65_vm10, %v246_v57  ;;  %v220_v59 = vrot.slane %v215_v58, %v515_v3 }
  0xce   :  { %v293_v60 = vpop.xlane.xlu1 %292 }
  0xcf   :  { %222 = vst.msk [vmem:[%s669_s2 + $0x6] sm:$0x1] %vm65_vm10, %v220_v59  ;;  %v298_v61 = vrot.slane %v293_v60, %v515_v3 }
  0xd1   :  { %300 = vst.msk [vmem:[%s669_s2 + $0x9] sm:$0x1] %vm65_vm10, %v298_v61  ;;  %v267_v62 = vpop.xlane.xlu0 %266 }
  0xd2   :  { %v272_v63 = vrot.slane %v267_v62, %v515_v3  ;;  %v345_v0 = vpop.xlane.xlu1 %344 }
  0xd3   :  { %v350_v1 = vrot.slane %v345_v0, %v515_v3 }
  0xd4   :  { %274 = vst.msk [vmem:[%s669_s2 + $0x8] sm:$0x1] %vm65_vm10, %v272_v63 }
  0xd5   :  { %352 = vst.msk [vmem:[%s669_s2 + $0xb] sm:$0x1] %vm65_vm10, %v350_v1  ;;  %v319_v2 = vpop.xlane.xlu0 %318 }
  0xd6   :  { %v324_v6 = vrot.slane %v319_v2, %v515_v3 }
  0xd7   :  { %v397_v7 = vpop.xlane.xlu1 %396 }
  0xd8   :  { %326 = vst.msk [vmem:[%s669_s2 + $0xa] sm:$0x1] %vm65_vm10, %v324_v6  ;;  %v402_v10 = vrot.slane %v397_v7, %v515_v3 }
  0xda   :  { %404 = vst.msk [vmem:[%s669_s2 + $0xd] sm:$0x1] %vm65_vm10, %v402_v10  ;;  %v371_v11 = vpop.xlane.xlu0 %370 }
  0xdb   :  { %v376_v13 = vrot.slane %v371_v11, %v515_v3 }
  0xdd   :  { %378 = vst.msk [vmem:[%s669_s2 + $0xc] sm:$0x1] %vm65_vm10, %v376_v13 }
  0xde   :  { %409 = vsyncpa [#allocation3], 1 }
  0xdf   :  { %410 = vsyncpa [#allocation5], 1 }

</bundles_post_ra>
